<compile_context>
chip_gen: v5e
topology: v5e:2x2
jax: 0.10.0
libtpu: 0.0.40
codegen_flags: <defaults>
</compile_context>

<pallas_src>
import functools

import jax
import jax.numpy as jnp
import numpy as np
from jax.experimental import pallas as pl
from jax.experimental.pallas import tpu as pltpu

_MAX_TM = 256  # max rows per tile; weights + activations stay far under VMEM limits


def _row_tile(n, max_tm=_MAX_TM):
    """Pick (row_tile, padded_rows): sublane aligned, as large as possible up to
    max_tm, keeping >= 2 grid steps when rows allow (v7x has 2 TensorCores)."""
    n8 = -(-n // 8) * 8
    if n8 <= max_tm:
        tm = -(-(n8 // 2) // 8) * 8 if n8 >= 16 else n8
    else:
        tm = max_tm
    n_pad = -(-n8 // tm) * tm
    return tm, n_pad


def _const_spec(shape):
    """Whole-array block that is the same for every grid step (weights/biases)."""
    return pl.BlockSpec(shape, lambda i: (0,) * len(shape))


# ----------------------------------------------------------------------------
# Kernel A: fused pair feature + local conv chain (-> gu) + relation-logit chain
# ----------------------------------------------------------------------------
def _local_chain_kernel(fi_ref, fj_ref,
                        w1_ref, b1_ref, w2_ref, b2_ref,
                        w3_ref, b3_ref, w4_ref, b4_ref, w5_ref, b5_ref,
                        gu_ref, logit_ref):
    fi = fi_ref[...]
    fj = fj_ref[...]
    # relation_u = cat([f_i, f_i - f_j], -1) built in-register (128-lane aligned)
    u = jnp.concatenate([fi, fi - fj], axis=-1)                               # (tm, 2C)
    # local_conv1 + local_bn1 + relu  (single (tm,2C)x(2C,256) MXU call)
    y = jnp.dot(u, w1_ref[...], preferred_element_type=jnp.float32) + b1_ref[...]
    y = jnp.maximum(y, 0.0)
    # local_conv2 + local_bn2 + relu  -> gu_output
    gu = jnp.dot(y, w2_ref[...], preferred_element_type=jnp.float32) + b2_ref[...]
    gu = jnp.maximum(gu, 0.0)
    gu_ref[...] = gu
    # relation logits: rn_conv2+bn+relu -> rn_conv3+bn+relu -> rn_conv4
    z = jnp.dot(gu, w3_ref[...], preferred_element_type=jnp.float32) + b3_ref[...]
    z = jnp.maximum(z, 0.0)
    z = jnp.dot(z, w4_ref[...], preferred_element_type=jnp.float32) + b4_ref[...]
    z = jnp.maximum(z, 0.0)
    logit_ref[...] = (jnp.dot(z, w5_ref[...], preferred_element_type=jnp.float32)
                      + b5_ref[...])


def local_chain_pallas(fi, fj, layers):
    """layers = [(w1,b1),(w2,b2),(w_rn2,b_rn2),(w_rn3,b_rn3),(w_rn4,b_rn4)]."""
    (w1, b1), (w2, b2), (w3, b3), (w4, b4), (w5, b5) = layers
    n, c = fi.shape
    tm, n_pad = _row_tile(n)
    if n_pad != n:
        fi = jnp.pad(fi, ((0, n_pad - n), (0, 0)))
        fj = jnp.pad(fj, ((0, n_pad - n), (0, 0)))
    c_gu, c_lg = w2.shape[1], w5.shape[1]
    params = (w1, b1, w2, b2, w3, b3, w4, b4, w5, b5)

    def row_spec(cols):
        return pl.BlockSpec((tm, cols), lambda i: (i, 0))

    # TODO(synk): cast matmul operands to bfloat16 (f32 accumulation) on v6e/v7x
    # once the accuracy budget allows; kept f32 to track the reference closely.
    gu, logits = pl.pallas_call(
        _local_chain_kernel,
        out_shape=(jax.ShapeDtypeStruct((n_pad, c_gu), jnp.float32),
                   jax.ShapeDtypeStruct((n_pad, c_lg), jnp.float32)),
        grid_spec=pltpu.PrefetchScalarGridSpec(
            num_scalar_prefetch=0,
            grid=(n_pad // tm,),
            in_specs=[row_spec(c), row_spec(c)]
                     + [_const_spec(p.shape) for p in params],
            out_specs=(row_spec(c_gu), row_spec(c_lg)),
        ),
        compiler_params=pltpu.CompilerParams(dimension_semantics=("parallel",)),
    )(fi, fj, *params)
    return gu[:n], logits[:n]


# ----------------------------------------------------------------------------
# Kernel B: SA_Layer attention over K neighbors + weighted aggregation + rn_conv1
#   gu row layout: one row per (batch*proposal), lanes = [k=0 chans | k=1 | ...]
# ----------------------------------------------------------------------------
def _attention_rn1_kernel(gu_ref, key_ref,
                          wq_ref, bq_ref, wk_ref, bk_ref, seg_ref,
                          w1_ref, b1_ref, o_ref, *, n_pairs, channels):
    # k_conv on relation_key
    kq = jnp.tanh(jnp.dot(key_ref[...], wk_ref[...],
                          preferred_element_type=jnp.float32) + bk_ref[...])   # (tm, D)
    # all K q-projections in ONE MXU call via a block-diagonal weight
    q_all = jnp.tanh(jnp.dot(gu_ref[...], wq_ref[...],
                             preferred_element_type=jnp.float32) + bq_ref[...])  # (tm, K*D)
    kq_rep = jnp.concatenate([kq] * n_pairs, axis=-1)                           # (tm, K*D)
    # per-neighbor energies via a segment-sum matmul (no masked lane slicing)
    e = jnp.dot(q_all * kq_rep, seg_ref[...],
                preferred_element_type=jnp.float32)                             # (tm, K)
    # softmax over the K neighbors; the module's extra att/sum(att) renorm is the
    # identity, so one EUP reciprocal covers both.
    m = jnp.max(e, axis=-1, keepdims=True)
    p = jnp.exp(e - m)
    s = jnp.sum(p, axis=-1, keepdims=True)
    att = p * pl.reciprocal(s, approx=True)                                     # (tm, K)
    # attention-weighted aggregation over the K neighbors (128-lane aligned slices)
    gu = gu_ref[...]
    h = att[:, 0:1] * gu[:, 0:channels]
    for k in range(1, n_pairs):
        h = h + att[:, k:k + 1] * gu[:, k * channels:(k + 1) * channels]
    # rn_conv1 fused (h never leaves VMEM)
    o_ref[...] = (jnp.dot(h, w1_ref[...], preferred_element_type=jnp.float32)
                  + b1_ref[...])


def attention_rn1_pallas(gu_kc, key_feat, wq, bq, wk, bk, w_rn1, b_rn1, n_pairs):
    bp, kc = gu_kc.shape
    c = key_feat.shape[1]
    dq = wq.shape[1]
    assert kc == n_pairs * c
    tm, bp_pad = _row_tile(bp)
    if bp_pad != bp:
        gu_kc = jnp.pad(gu_kc, ((0, bp_pad - bp), (0, 0)))
        key_feat = jnp.pad(key_feat, ((0, bp_pad - bp), (0, 0)))
    # block-diagonal q weight -> single (tm, K*C) x (K*C, K*D) matmul for all K
    wq_bd = jnp.kron(jnp.eye(n_pairs, dtype=wq.dtype), wq)                # (K*C, K*D)
    bq_rep = jnp.tile(bq, (1, n_pairs))                                   # (1, K*D)
    seg = jnp.repeat(jnp.eye(n_pairs, dtype=jnp.float32), dq, axis=0)     # (K*D, K)
    params = (wq_bd, bq_rep, wk, bk, seg, w_rn1, b_rn1)

    out = pl.pallas_call(
        functools.partial(_attention_rn1_kernel, n_pairs=n_pairs, channels=c),
        out_shape=jax.ShapeDtypeStruct((bp_pad, c), jnp.float32),
        grid_spec=pltpu.PrefetchScalarGridSpec(
            num_scalar_prefetch=0,
            grid=(bp_pad // tm,),
            in_specs=[pl.BlockSpec((tm, kc), lambda i: (i, 0)),
                      pl.BlockSpec((tm, c), lambda i: (i, 0))]
                     + [_const_spec(p.shape) for p in params],
            out_specs=pl.BlockSpec((tm, c), lambda i: (i, 0)),
        ),
        compiler_params=pltpu.CompilerParams(dimension_semantics=("parallel",)),
    )(gu_kc, key_feat, *params)
    return out[:bp]


# ----------------------------------------------------------------------------
# Parameters (deterministic synthetic init) + BatchNorm folding (eval mode)
# ----------------------------------------------------------------------------
def init_params(key):
    ks = iter(jax.random.split(key, 64))

    def conv_w(cin, cout):  # stored (Cin, Cout) == torch_weight.T
        return 0.05 * jax.random.normal(next(ks), (cin, cout), jnp.float32)

    def conv_b(cout):
        return 0.02 * jax.random.normal(next(ks), (1, cout), jnp.float32)

    def bn(c):
        gamma = 1.0 + 0.1 * jax.random.normal(next(ks), (c,), jnp.float32)
        beta = 0.1 * jax.random.normal(next(ks), (c,), jnp.float32)
        mean = 0.1 * jax.random.normal(next(ks), (c,), jnp.float32)
        var = 1.0 + 0.1 * jnp.abs(jax.random.normal(next(ks), (c,), jnp.float32))
        return gamma, beta, mean, var

    p = {}
    p['local_conv1'] = (conv_w(256, 256), conv_b(256)); p['local_bn1'] = bn(256)
    p['local_conv2'] = (conv_w(256, 128), conv_b(128)); p['local_bn2'] = bn(128)
    p['sa_q'] = (conv_w(128, 32), conv_b(32))
    p['sa_k'] = (conv_w(128, 32), conv_b(32))
    # TODO(synk): SA_Layer's v_conv / trans_conv / after_norm only feed the
    # unused `global_relation` return value (dead w.r.t. end_points); omitted.
    p['rn_conv1'] = (conv_w(128, 128), conv_b(128))
    p['rn_conv2'] = (conv_w(128, 128), conv_b(128)); p['rn_bn1'] = bn(128)
    p['rn_conv3'] = (conv_w(128, 128), conv_b(128)); p['rn_bn2'] = bn(128)
    p['rn_conv4'] = (conv_w(128, 2), conv_b(2))
    return p


def fold_bn(w, b, bn_params, eps=1e-5):
    gamma, beta, mean, var = bn_params
    scale = gamma / jnp.sqrt(var + eps)
    return w * scale[None, :], (b - mean[None, :]) * scale[None, :] + beta[None, :]


# ----------------------------------------------------------------------------
# SRModule.forward
# ----------------------------------------------------------------------------
def sr_module_forward(params, feature, end_points, relation_pair=3, rng=None):
    bs, fea_in, num_proposal = feature.shape
    feat = jnp.transpose(feature, (0, 2, 1))          # (bs, P, C)
    idx_obj = end_points['idx_obj']                   # (bs, P) int32
    sum_one = end_points['sum_one']                   # python list of ints
    # (pred_center / aggregated_vote_xyz are read but never used in the original
    #  forward -> dead code, not touched here.)

    # random neighbor sampling (deterministic equivalent of torch.randint)
    keys = jax.random.split(rng, bs)
    idx_parts = []
    for i, num in enumerate(sum_one):
        n = int(num) if int(num) >= relation_pair else num_proposal
        idx_parts.append(
            jax.random.randint(keys[i], (1, num_proposal, relation_pair), 0, n,
                               dtype=jnp.int32))
    idx_all = jnp.concatenate(idx_parts, axis=0)      # (bs, P, K)

    barange = jnp.arange(bs)[:, None, None]
    idx_j = idx_obj[barange, idx_all]                 # == batched_index_select
    end_points = dict(end_points)
    end_points['nearest_n_index'] = idx_j

    C, K, P = fea_in, relation_pair, num_proposal
    fi = jnp.broadcast_to(feat[:, :, None, :], (bs, P, K, C))
    fj = feat[barange, idx_j]                         # gather neighbor features
    fi_flat = fi.reshape(bs * P * K, C)
    fj_flat = fj.reshape(bs * P * K, C)

    # BN folding (eval mode)
    w1, b1 = fold_bn(*params['local_conv1'], params['local_bn1'])
    w2, b2 = fold_bn(*params['local_conv2'], params['local_bn2'])
    w_rn2, b_rn2 = fold_bn(*params['rn_conv2'], params['rn_bn1'])
    w_rn3, b_rn3 = fold_bn(*params['rn_conv3'], params['rn_bn2'])
    w_rn4, b_rn4 = params['rn_conv4']

    # Kernel A: pair feature -> local convs (gu) + relation-logit chain, fused.
    gu, logits0 = local_chain_pallas(
        fi_flat, fj_flat,
        [(w1, b1), (w2, b2), (w_rn2, b_rn2), (w_rn3, b_rn3), (w_rn4, b_rn4)])

    # Kernel B: SA_Layer attention + aggregation over K neighbors + rn_conv1.
    c2 = gu.shape[1]
    gu_kc = gu.reshape(bs * P, K * c2)                # free reshape (row-major)
    key_feat = feat.reshape(bs * P, C)                # relation_key
    wq, bq = params['sa_q']
    wk, bk = params['sa_k']
    w_rn1, b_rn1 = params['rn_conv1']
    rnf = attention_rn1_pallas(gu_kc, key_feat, wq, bq, wk, bk, w_rn1, b_rn1, K)

    end_points['rn_feature'] = jnp.transpose(rnf.reshape(bs, P, c2), (0, 2, 1))
    end_points['rn_logits_0'] = jnp.transpose(
        logits0.reshape(bs, P * K, 2), (0, 2, 1))
    # 'support' not in relation_type='semantic_relation' -> rn_*_1 branch skipped
    return end_points


# ----------------------------------------------------------------------------
# Pure-JAX reference (high precision) for correctness checking
# ----------------------------------------------------------------------------
def reference_outputs(params, feature, idx_j, relation_pair=3):
    hp = jax.lax.Precision.HIGHEST
    bs, C, P = feature.shape
    K = relation_pair
    feat = jnp.transpose(feature, (0, 2, 1))
    bar = jnp.arange(bs)[:, None, None]
    fi = jnp.broadcast_to(feat[:, :, None, :], (bs, P, K, C))
    fj = feat[bar, idx_j]
    u = jnp.concatenate([fi, fi - fj], axis=-1).reshape(-1, 2 * C)

    def lin(x, w, b):
        return jnp.dot(x, w, precision=hp) + b

    w1, b1 = fold_bn(*params['local_conv1'], params['local_bn1'])
    y1 = jax.nn.relu(lin(u, w1, b1))
    w2, b2 = fold_bn(*params['local_conv2'], params['local_bn2'])
    gu = jax.nn.relu(lin(y1, w2, b2))
    wq, bq = params['sa_q']
    wk, bk = params['sa_k']
    q = jnp.tanh(lin(gu, wq, bq)).reshape(bs * P, K, -1)
    kk = jnp.tanh(lin(feat.reshape(bs * P, C), wk, bk))
    energy = jnp.sum(q * kk[:, None, :], axis=-1)
    att = jax.nn.softmax(energy, axis=-1)
    att_w = att / jnp.sum(att, axis=-1, keepdims=True)
    h = jnp.sum(att_w[:, :, None] * gu.reshape(bs * P, K, -1), axis=1)
    w_rn1, b_rn1 = params['rn_conv1']
    rn_feature = jnp.transpose(lin(h, w_rn1, b_rn1).reshape(bs, P, -1), (0, 2, 1))
    w_rn2, b_rn2 = fold_bn(*params['rn_conv2'], params['rn_bn1'])
    w_rn3, b_rn3 = fold_bn(*params['rn_conv3'], params['rn_bn2'])
    w_rn4, b_rn4 = params['rn_conv4']
    z = jax.nn.relu(lin(gu, w_rn2, b_rn2))
    z = jax.nn.relu(lin(z, w_rn3, b_rn3))
    rn_logits_0 = jnp.transpose(
        lin(z, w_rn4, b_rn4).reshape(bs, P * K, 2), (0, 2, 1))
    return rn_feature, rn_logits_0


if __name__ == "__main__":
    key = jax.random.PRNGKey(0)
    k_param, k_feat, k_idx, k_xyz, k_rand = jax.random.split(key, 5)

    bs, fea_in, num_proposal, relation_pair = 2, 128, 8, 3
    params = init_params(k_param)
    feature = jax.random.normal(k_feat, (bs, fea_in, num_proposal), jnp.float32)
    idx_obj = jax.random.randint(k_idx, (bs, num_proposal), 0, num_proposal,
                                 dtype=jnp.int32)
    end_points = {
        'idx_obj': idx_obj,
        'sum_one': [num_proposal, 2],  # 2 < relation_pair -> falls back to num_proposal
        'aggregated_vote_xyz': jax.random.normal(k_xyz, (bs, num_proposal, 3),
                                                 jnp.float32),
    }

    out = sr_module_forward(params, feature, end_points,
                            relation_pair=relation_pair, rng=k_rand)
    jax.block_until_ready(out['rn_feature'])
    jax.block_until_ready(out['rn_logits_0'])
    jax.block_until_ready(out['nearest_n_index'])

    ref_feat, ref_logits = reference_outputs(params, feature,
                                             out['nearest_n_index'],
                                             relation_pair=relation_pair)
    np.testing.assert_allclose(np.asarray(out['rn_feature']), np.asarray(ref_feat),
                               rtol=2e-2, atol=2e-3)
    np.testing.assert_allclose(np.asarray(out['rn_logits_0']), np.asarray(ref_logits),
                               rtol=2e-2, atol=2e-3)
    print("KERNEL_OK")
</pallas_src>

<mosaic_0001>
module attributes {stable_mosaic.version = 11 : i64} {
  func.func @_local_chain_kernel(%arg0: i32, %arg1: memref<24x128xf32, #tpu.memory_space<vmem>>, %arg2: memref<24x128xf32, #tpu.memory_space<vmem>>, %arg3: memref<256x256xf32, #tpu.memory_space<vmem>>, %arg4: memref<1x256xf32, #tpu.memory_space<vmem>>, %arg5: memref<256x128xf32, #tpu.memory_space<vmem>>, %arg6: memref<1x128xf32, #tpu.memory_space<vmem>>, %arg7: memref<128x128xf32, #tpu.memory_space<vmem>>, %arg8: memref<1x128xf32, #tpu.memory_space<vmem>>, %arg9: memref<128x128xf32, #tpu.memory_space<vmem>>, %arg10: memref<1x128xf32, #tpu.memory_space<vmem>>, %arg11: memref<128x2xf32, #tpu.memory_space<vmem>>, %arg12: memref<1x2xf32, #tpu.memory_space<vmem>>, %arg13: memref<24x128xf32, #tpu.memory_space<vmem>>, %arg14: memref<24x2xf32, #tpu.memory_space<vmem>>) attributes {dimension_semantics = [#tpu.dimension_semantics<parallel>], iteration_bounds = array<i64: 2>, scalar_prefetch = 0 : i64, scratch_operands = 0 : i64, tpu.core_type = #tpu.core_type<tc>, window_params = [{transform_indices = @transform_0, window_bounds = array<i64: 24, 128>}, {transform_indices = @transform_1, window_bounds = array<i64: 24, 128>}, {pipeline_mode = #tpu.pipeline_mode<synchronous>, transform_indices = @transform_2, window_bounds = array<i64: 256, 256>}, {pipeline_mode = #tpu.pipeline_mode<synchronous>, transform_indices = @transform_3, window_bounds = array<i64: 1, 256>}, {pipeline_mode = #tpu.pipeline_mode<synchronous>, transform_indices = @transform_4, window_bounds = array<i64: 256, 128>}, {pipeline_mode = #tpu.pipeline_mode<synchronous>, transform_indices = @transform_5, window_bounds = array<i64: 1, 128>}, {pipeline_mode = #tpu.pipeline_mode<synchronous>, transform_indices = @transform_6, window_bounds = array<i64: 128, 128>}, {pipeline_mode = #tpu.pipeline_mode<synchronous>, transform_indices = @transform_7, window_bounds = array<i64: 1, 128>}, {pipeline_mode = #tpu.pipeline_mode<synchronous>, transform_indices = @transform_8, window_bounds = array<i64: 128, 128>}, {pipeline_mode = #tpu.pipeline_mode<synchronous>, transform_indices = @transform_9, window_bounds = array<i64: 1, 128>}, {pipeline_mode = #tpu.pipeline_mode<synchronous>, transform_indices = @transform_10, window_bounds = array<i64: 128, 2>}, {pipeline_mode = #tpu.pipeline_mode<synchronous>, transform_indices = @transform_11, window_bounds = array<i64: 1, 2>}, {transform_indices = @transform_12, window_bounds = array<i64: 24, 128>}, {transform_indices = @transform_13, window_bounds = array<i64: 24, 2>}]} {
    %c0 = arith.constant 0 : index
    %c0_0 = arith.constant 0 : index
    %0 = vector.load %arg1[%c0, %c0_0] : memref<24x128xf32, #tpu.memory_space<vmem>>, vector<24x128xf32>
    %c0_1 = arith.constant 0 : index
    %c0_2 = arith.constant 0 : index
    %1 = vector.load %arg2[%c0_1, %c0_2] : memref<24x128xf32, #tpu.memory_space<vmem>>, vector<24x128xf32>
    %2 = arith.subf %0, %1 : vector<24x128xf32>
    %3 = tpu.concatenate %0, %2 in 1 : vector<24x128xf32>, vector<24x128xf32> -> vector<24x256xf32>
    %c0_3 = arith.constant 0 : index
    %c0_4 = arith.constant 0 : index
    %4 = vector.load %arg3[%c0_3, %c0_4] : memref<256x256xf32, #tpu.memory_space<vmem>>, vector<256x256xf32>
    %cst = arith.constant dense<0.000000e+00> : vector<24x256xf32>
    %5 = tpu.matmul %3, %4, %cst {dimension_numbers = #tpu.dot_dimension_numbers<[1], [0], [0], [1], [0, 0, 1, 1], [], []>} : vector<24x256xf32>, vector<256x256xf32>, vector<24x256xf32> -> vector<24x256xf32>
    %c0_5 = arith.constant 0 : index
    %c0_6 = arith.constant 0 : index
    %6 = vector.load %arg4[%c0_5, %c0_6] : memref<1x256xf32, #tpu.memory_space<vmem>>, vector<1x256xf32>
    %7 = vector.broadcast %6 : vector<1x256xf32> to vector<24x256xf32>
    %8 = arith.addf %5, %7 : vector<24x256xf32>
    %cst_7 = arith.constant 0.000000e+00 : f32
    %9 = vector.broadcast %cst_7 : f32 to vector<24x256xf32>
    %10 = arith.maximumf %8, %9 : vector<24x256xf32>
    %c0_8 = arith.constant 0 : index
    %c0_9 = arith.constant 0 : index
    %11 = vector.load %arg5[%c0_8, %c0_9] : memref<256x128xf32, #tpu.memory_space<vmem>>, vector<256x128xf32>
    %cst_10 = arith.constant dense<0.000000e+00> : vector<24x128xf32>
    %12 = tpu.matmul %10, %11, %cst_10 {dimension_numbers = #tpu.dot_dimension_numbers<[1], [0], [0], [1], [0, 0, 1, 1], [], []>} : vector<24x256xf32>, vector<256x128xf32>, vector<24x128xf32> -> vector<24x128xf32>
    %c0_11 = arith.constant 0 : index
    %c0_12 = arith.constant 0 : index
    %13 = vector.load %arg6[%c0_11, %c0_12] : memref<1x128xf32, #tpu.memory_space<vmem>>, vector<1x128xf32>
    %14 = vector.broadcast %13 : vector<1x128xf32> to vector<24x128xf32>
    %15 = arith.addf %12, %14 : vector<24x128xf32>
    %cst_13 = arith.constant 0.000000e+00 : f32
    %16 = vector.broadcast %cst_13 : f32 to vector<24x128xf32>
    %17 = arith.maximumf %15, %16 : vector<24x128xf32>
    %c0_14 = arith.constant 0 : index
    %c0_15 = arith.constant 0 : index
    %18 = vector.load %arg13[%c0_14, %c0_15] : memref<24x128xf32, #tpu.memory_space<vmem>>, vector<24x128xf32>
    tpu.vector_store %arg13[%c0_14, %c0_15], %17 {strides = array<i32>} : memref<24x128xf32, #tpu.memory_space<vmem>>, vector<24x128xf32>,
    %c0_16 = arith.constant 0 : index
    %c0_17 = arith.constant 0 : index
    %19 = vector.load %arg7[%c0_16, %c0_17] : memref<128x128xf32, #tpu.memory_space<vmem>>, vector<128x128xf32>
    %cst_18 = arith.constant dense<0.000000e+00> : vector<24x128xf32>
    %20 = tpu.matmul %17, %19, %cst_18 {dimension_numbers = #tpu.dot_dimension_numbers<[1], [0], [0], [1], [0, 0, 1, 1], [], []>} : vector<24x128xf32>, vector<128x128xf32>, vector<24x128xf32> -> vector<24x128xf32>
    %c0_19 = arith.constant 0 : index
    %c0_20 = arith.constant 0 : index
    %21 = vector.load %arg8[%c0_19, %c0_20] : memref<1x128xf32, #tpu.memory_space<vmem>>, vector<1x128xf32>
    %22 = vector.broadcast %21 : vector<1x128xf32> to vector<24x128xf32>
    %23 = arith.addf %20, %22 : vector<24x128xf32>
    %cst_21 = arith.constant 0.000000e+00 : f32
    %24 = vector.broadcast %cst_21 : f32 to vector<24x128xf32>
    %25 = arith.maximumf %23, %24 : vector<24x128xf32>
    %c0_22 = arith.constant 0 : index
    %c0_23 = arith.constant 0 : index
    %26 = vector.load %arg9[%c0_22, %c0_23] : memref<128x128xf32, #tpu.memory_space<vmem>>, vector<128x128xf32>
    %cst_24 = arith.constant dense<0.000000e+00> : vector<24x128xf32>
    %27 = tpu.matmul %25, %26, %cst_24 {dimension_numbers = #tpu.dot_dimension_numbers<[1], [0], [0], [1], [0, 0, 1, 1], [], []>} : vector<24x128xf32>, vector<128x128xf32>, vector<24x128xf32> -> vector<24x128xf32>
    %c0_25 = arith.constant 0 : index
    %c0_26 = arith.constant 0 : index
    %28 = vector.load %arg10[%c0_25, %c0_26] : memref<1x128xf32, #tpu.memory_space<vmem>>, vector<1x128xf32>
    %29 = vector.broadcast %28 : vector<1x128xf32> to vector<24x128xf32>
    %30 = arith.addf %27, %29 : vector<24x128xf32>
    %cst_27 = arith.constant 0.000000e+00 : f32
    %31 = vector.broadcast %cst_27 : f32 to vector<24x128xf32>
    %32 = arith.maximumf %30, %31 : vector<24x128xf32>
    %c0_28 = arith.constant 0 : index
    %c0_29 = arith.constant 0 : index
    %33 = vector.load %arg11[%c0_28, %c0_29] : memref<128x2xf32, #tpu.memory_space<vmem>>, vector<128x2xf32>
    %cst_30 = arith.constant dense<0.000000e+00> : vector<24x2xf32>
    %34 = tpu.matmul %32, %33, %cst_30 {dimension_numbers = #tpu.dot_dimension_numbers<[1], [0], [0], [1], [0, 0, 1, 1], [], []>} : vector<24x128xf32>, vector<128x2xf32>, vector<24x2xf32> -> vector<24x2xf32>
    %c0_31 = arith.constant 0 : index
    %c0_32 = arith.constant 0 : index
    %35 = vector.load %arg12[%c0_31, %c0_32] : memref<1x2xf32, #tpu.memory_space<vmem>>, vector<1x2xf32>
    %36 = vector.broadcast %35 : vector<1x2xf32> to vector<24x2xf32>
    %37 = arith.addf %34, %36 : vector<24x2xf32>
    %c0_33 = arith.constant 0 : index
    %c0_34 = arith.constant 0 : index
    %38 = vector.load %arg14[%c0_33, %c0_34] : memref<24x2xf32, #tpu.memory_space<vmem>>, vector<24x2xf32>
    tpu.vector_store %arg14[%c0_33, %c0_34], %37 {strides = array<i32>} : memref<24x2xf32, #tpu.memory_space<vmem>>, vector<24x2xf32>,
    return
  }
  func.func @transform_0(%arg0: i32) -> (i32, i32) {
    %c0_i32 = arith.constant 0 : i32
    %c0_i32_0 = arith.constant 0 : i32
    return %arg0, %c0_i32 : i32, i32
  }
  func.func @transform_1(%arg0: i32) -> (i32, i32) {
    %c0_i32 = arith.constant 0 : i32
    %c0_i32_0 = arith.constant 0 : i32
    return %arg0, %c0_i32 : i32, i32
  }
  func.func @transform_2(%arg0: i32) -> (i32, i32) {
    %c0_i32 = arith.constant 0 : i32
    %c0_i32_0 = arith.constant 0 : i32
    %c0_i32_1 = arith.constant 0 : i32
    return %c0_i32, %c0_i32_0 : i32, i32
  }
  func.func @transform_3(%arg0: i32) -> (i32, i32) {
    %c0_i32 = arith.constant 0 : i32
    %c0_i32_0 = arith.constant 0 : i32
    %c0_i32_1 = arith.constant 0 : i32
    return %c0_i32, %c0_i32_0 : i32, i32
  }
  func.func @transform_4(%arg0: i32) -> (i32, i32) {
    %c0_i32 = arith.constant 0 : i32
    %c0_i32_0 = arith.constant 0 : i32
    %c0_i32_1 = arith.constant 0 : i32
    return %c0_i32, %c0_i32_0 : i32, i32
  }
  func.func @transform_5(%arg0: i32) -> (i32, i32) {
    %c0_i32 = arith.constant 0 : i32
    %c0_i32_0 = arith.constant 0 : i32
    %c0_i32_1 = arith.constant 0 : i32
    return %c0_i32, %c0_i32_0 : i32, i32
  }
  func.func @transform_6(%arg0: i32) -> (i32, i32) {
    %c0_i32 = arith.constant 0 : i32
    %c0_i32_0 = arith.constant 0 : i32
    %c0_i32_1 = arith.constant 0 : i32
    return %c0_i32, %c0_i32_0 : i32, i32
  }
  func.func @transform_7(%arg0: i32) -> (i32, i32) {
    %c0_i32 = arith.constant 0 : i32
    %c0_i32_0 = arith.constant 0 : i32
    %c0_i32_1 = arith.constant 0 : i32
    return %c0_i32, %c0_i32_0 : i32, i32
  }
  func.func @transform_8(%arg0: i32) -> (i32, i32) {
    %c0_i32 = arith.constant 0 : i32
    %c0_i32_0 = arith.constant 0 : i32
    %c0_i32_1 = arith.constant 0 : i32
    return %c0_i32, %c0_i32_0 : i32, i32
  }
  func.func @transform_9(%arg0: i32) -> (i32, i32) {
    %c0_i32 = arith.constant 0 : i32
    %c0_i32_0 = arith.constant 0 : i32
    %c0_i32_1 = arith.constant 0 : i32
    return %c0_i32, %c0_i32_0 : i32, i32
  }
  func.func @transform_10(%arg0: i32) -> (i32, i32) {
    %c0_i32 = arith.constant 0 : i32
    %c0_i32_0 = arith.constant 0 : i32
    %c0_i32_1 = arith.constant 0 : i32
    return %c0_i32, %c0_i32_0 : i32, i32
  }
  func.func @transform_11(%arg0: i32) -> (i32, i32) {
    %c0_i32 = arith.constant 0 : i32
    %c0_i32_0 = arith.constant 0 : i32
    %c0_i32_1 = arith.constant 0 : i32
    return %c0_i32, %c0_i32_0 : i32, i32
  }
  func.func @transform_12(%arg0: i32) -> (i32, i32) {
    %c0_i32 = arith.constant 0 : i32
    %c0_i32_0 = arith.constant 0 : i32
    return %arg0, %c0_i32 : i32, i32
  }
  func.func @transform_13(%arg0: i32) -> (i32, i32) {
    %c0_i32 = arith.constant 0 : i32
    %c0_i32_0 = arith.constant 0 : i32
    return %arg0, %c0_i32 : i32, i32
  }
}

</mosaic_0001>

<bundles_post_ra>
// kernel: tpu_custom_call.1
= control target key start
LH: loop header
LB: loop body
LE: loop exit
PB: predicated region body
PF: predicated region fallthrough
CT: control target
= control target key end

     0   :  { %s1958_s0 = inlined_call_operand.hbm [shape: f32[48,128], index: 0, kind: input, shape index: {}]   ;;  %s1959_s1 = inlined_call_operand.hbm [shape: f32[48,128], index: 1, kind: input, shape index: {}]   ;;  %s1960_s2 = inlined_call_operand.hbm [shape: f32[256,256], index: 2, kind: input, shape index: {}]   ;;  %s1961_s3 = inlined_call_operand.vmem [shape: f32[1,256], index: 3, kind: input, shape index: {}]   ;;  %s1962_s4 = inlined_call_operand.hbm [shape: f32[256,128], index: 4, kind: input, shape index: {}]   ;;  %s1963_s5 = inlined_call_operand.vmem [shape: f32[1,128], index: 5, kind: input, shape index: {}]   ;;  %s1964_s6 = inlined_call_operand.vmem [shape: f32[128,128], index: 6, kind: input, shape index: {}]   ;;  %s1965_s7 = inlined_call_operand.vmem [shape: f32[1,128], index: 7, kind: input, shape index: {}]   ;;  %s1966_s8 = inlined_call_operand.hbm [shape: f32[128,128], index: 8, kind: input, shape index: {}]   ;;  %s1967_s9 = inlined_call_operand.vmem [shape: f32[1,128], index: 9, kind: input, shape index: {}]   ;;  %s1968_s10 = inlined_call_operand.vmem [shape: f32[128,2], index: 10, kind: input, shape index: {}]   ;;  %s1969_s11 = inlined_call_operand.vmem [shape: f32[1,2], index: 11, kind: input, shape index: {}]   ;;  %s1970_s12 = inlined_call_operand.hbm [shape: f32[48,128], index: 12, kind: output, shape index: {0}]   ;;  %s1971_s13 = inlined_call_operand.vmem [shape: f32[48,2], index: 13, kind: output, shape index: {1}]  }
   0x1   :  { %1984 = sst [smem:[#allocation23_spill]] %s1960_s2 }
   0x2   :  { %1985 = sst [smem:[#allocation24_spill]] %s1962_s4 }
   0x3   :  { %1986 = sst [smem:[#allocation25_spill]] %s1966_s8 }
   0x4   :  { %1987 = sst [smem:[#allocation26_spill]] %s1969_s11 }
   0x5   :  { %1988 = sst [smem:[#allocation27_spill]] %s1970_s12 }
   0x6   :  { %1989 = sst [smem:[#allocation28_spill]] %s1971_s13 }
   0x7   :  { %19 = vsyncpa [#allocation3], 0 }
   0x8   :  { %21 = vsyncpa [#allocation3 + $0x1], 0 }
   0x9   :  { %22 = vsyncpa [#allocation6], 0 }
   0xa   :  { %24 = vsyncpa [#allocation6 + $0x1], 0 }
   0xb   :  { %25 = vsyncpa [#allocation9], 0 }
   0xc   :  { %26 = vsyncpa [#allocation4], 0 }
   0xd   :  { %28 = vsyncpa [#allocation4 + $0x1], 0  ;;  %s1629_s25 = smov 0   ;;  %s1631_s26 = smov 0  }
   0xe   :  { %s1633_s27 = smov 0   ;;  %s1635_s28 = smov 0  }
   0xf LB: > { %1990 = sst [smem:[#allocation17_spill]] %s1536_s25  ;;  %s1650_s29 = sadd.s32 4294967295, %s1548_s28   ;;  %s1548_s28 = sphi %s1635_s28, %s2015_s28   ;;  %s1544_s27 = sphi %s1633_s27, %s2017_s27   ;;  %s1540_s26 = sphi %s1631_s26, %s2019_s26   ;;  %s1536_s25 = sphi %s1629_s25, %s2018_s25  }
  0x10   : > { %1991 = sst [smem:[#allocation18_spill]] %s1544_s27  ;;  %s1174_s30 = sadd.s32 4294967294, %s1548_s28  }
  0x11   : > { %p54_p0 = scmp.ne.s32.totalorder %s1540_s26, %s1536_s25  ;;  %p55_p1 = scmp.eq.s32.totalorder %s1650_s29, 0 }
  0x12   : > { %p314_p2 = scmp.eq.s32.totalorder %s1650_s29, 1  ;;  %p320_p3 = scmp.eq.s32.totalorder %s1174_s30, 1 }
  0x13   : > { %p1659_p4 = por %p55_p1, %p54_p0  ;;  %p1175_p5 = scmp.ge.s32.totalorder %s1548_s28, 1 }
  0x14   : > { %p1664_p6 = por %p320_p3, %p54_p0  ;;  %p353_p7 = scmp.lt.s32.totalorder %s1548_s28, 3 }
  0x15   : > { %s1995_s2 = sld [smem:[#allocation23_spill]]  ;;  %s1550_s20 = smov [#allocation7]  }
  0x16   : > { %s1993_s15 = scalar_select %p1664_p6, 1, 0 }
  0x17   : > { %p1672_p8 = pnand %p1175_p5, %p353_p7  ;;  %s366_s21 = sshll.u32 %s1550_s20, 4  ;;  %s367_s21 = int_to_ptr.vmem [resolvable:$true] %s366_s21 }
  0x18   : > { %1994 = sst [smem:[#allocation19_spill]] %s1993_s15  ;;  %s1551_s16 = smov 256  }
  0x19   : > { %p1246_p9 = pneg %p1672_p8  ;;  %s1998_s4 = sld [smem:[#allocation24_spill]] }
  0x1a   : > { %s1552_s17 = smov 16   ;;  %s1553_s20 = smov [#allocation8]  }
  0x1b   : > { %s364_s18 = sshll.u32 %s1995_s2, 4  ;;  %p1680_p10 = pnand %p1246_p9, %p55_p1  ;;  %s365_s18 = int_to_ptr.hbm [resolvable:$true] %s364_s18 }
  0x1c   : > { %s383_s2 = sshll.u32 %s1553_s20, 4  ;;  %s1973_s15 = smov 128   ;;  %s384_s2 = int_to_ptr.vmem [resolvable:$true] %s383_s2 }
  0x1d   : > { %1249 = dma.hbm_to_vmem [thread:$0]  (!%p1680_p10), %s365_s18, 8192, %s367_s21, [#allocation6], %s1551_s16, %s1551_s16, %s1552_s17  }
  0x1e   : > { %s1975_s23 = smov 8   ;;  %s1999_s8 = sld [smem:[#allocation25_spill]] }
  0x1f   : > { %s381_s30 = sshll.u32 %s1998_s4, 4  ;;  %s1556_s21 = smov [#allocation10]   ;;  %s382_s30 = int_to_ptr.hbm [resolvable:$true] %s381_s30 }
  0x20   : > { %1252 = dma.hbm_to_vmem [thread:$0]  (!%p1680_p10), %s382_s30, 4096, %s384_s2, [#allocation9], %s1973_s15, %s1973_s15, %s1975_s23  }
  0x21   : > { %s406_s16 = sshll.u32 %s1556_s21, 4  ;;  %s1704_s17 = sadd.s32 1, %s1548_s28   ;;  %s407_s16 = int_to_ptr.vmem [resolvable:$true] %s406_s16 }
  0x22   : > { %2000 = sst [smem:[#allocation20_spill]] %s1704_s17  ;;  %s38_s2 = ssub.s32 %s1548_s28, %s1704_s17 }
  0x23   : > { %s41_s30 = sadd.s32 1, %s1544_s27  ;;  %p39_p12 = scmp.eq.s32.totalorder %s38_s2, 0 }
  0x24   : > { %s404_s18 = sshll.u32 %s1999_s8, 4  ;;  %p48_p13 = scmp.ne.s32.totalorder %s1544_s27, %s1540_s26  ;;  %s405_s18 = int_to_ptr.hbm [resolvable:$true] %s404_s18 }
  0x25   : > { %1255 = dma.hbm_to_vmem [thread:$0]  (!%p1680_p10), %s405_s18, 2048, %s407_s16, [#allocation9], %s1973_s15, %s1973_s15, %s1975_s23  }
  0x26   : > { %p49_p0 = scmp.eq.s32.totalorder %s1548_s28, 0  ;;  %p1270_p3 = scmp.lt.s32.totalorder %s1548_s28, 2 }
  0x27   : > { %s1714_s4 = scalar_select %p39_p12, %s1544_s27, %s41_s30  }
  0x28   : > { %p50_p5 = por %p49_p0, %p48_p13  ;;  %p1718_p7 = por %p314_p2, %p48_p13 }
  0x29   : > { %2001 = sst [smem:[#allocation21_spill]] %s1714_s4  ;;  %s429_s22 = sand.u32 1, %s1544_s27  }
  0x2a   : > { %s2002_s20 = scalar_select %p1718_p7, 1, 0 }
  0x2b   : > { %s1190_s24 = smul.u32 24, %s1548_s28  ;;  %p1727_p9 = pnand %p1270_p3, %p50_p5 }
  0x2c   : > { %2003 = sst [smem:[#allocation22_spill]] %s2002_s20  ;;  %s1225_s18 = smul.u32 24, %s429_s22 }
  0x2d   : > { %s438_s15 = scalar_lea.hbm %s1958_s0, %s1190_s24  ;;  %s430_s4 = scalar_lea.sflag [#allocation3], %s429_s22 }
  0x2e   : > { %s439_s30 = sshll.u32 %s438_s15, 4  ;;  %s433_s23 = scalar_lea.vmem [#allocation2], %s1225_s18  ;;  %s440_s30 = int_to_ptr.hbm [resolvable:$true] %s439_s30 }
  0x2f   : > { %s441_s8 = sshll.u32 %s433_s23, 4  ;;  %s1410_s17 = sshra.s32 %s440_s30, 4  ;;  %s442_s8 = int_to_ptr.vmem [resolvable:$true] %s441_s8  ;;  %s1411_s17 = int_to_ptr.hbm [resolvable:$true] %s1410_s17 }
  0x30   : > { %s1412_s27 = scalar_lea.hbm %s1411_s17, 24  ;;  %p1414_p10 = pneg %p1727_p9 }
  0x31   : > { %p1413_p2 = scmp.ne.s32.totalorder %s1411_s17, %s1412_s27  ;;  %s1417_s25 = scalar_lea.hbm %s1958_s0, 48 }
  0x32   : > { %p1418_p0 = scmp.lt.s32.totalorder %s1411_s17, %s1958_s0  ;;  %p1419_p3 = scmp.lt.s32.totalorder %s1417_s25, %s1412_s27 }
  0x33   : > { %p1415_p12 = pnand %p1414_p10, %p1413_p2 }
  0x34   : > { %p1420_p5 = por %p1419_p3, %p1418_p0 }
  0x35   : > { %p1416_p13 = pneg %p1415_p12 }
  0x37   : > { %p1421_p11 = pnand %p1420_p5, %p1416_p13 }
  0x39   : > { %1424 = shalt.err (!%p1421_p11)
}
  0x3a   : > { %s2005_s23 = smov 8   ;;  %s2006_s22 = smov 128  }
  0x3b   : > { %1259 = dma.hbm_to_vmem [thread:$0]  (!%p1727_p9), %s440_s30, 384, %s442_s8, %s430_s4, %s2006_s22, %s2006_s22, %s2005_s23  }
  0x3c   : > { %s451_s11 = sand.u32 1, %s1548_s28   ;;  %s460_s16 = scalar_lea.hbm %s1959_s1, %s1190_s24 }
  0x3d   : > { %s461_s20 = sshll.u32 %s460_s16, 4  ;;  %s455_s13 = scalar_lea.vmem [#allocation5], %s1225_s18  ;;  %s462_s20 = int_to_ptr.hbm [resolvable:$true] %s461_s20 }
  0x3e   : > { %s463_s17 = sshll.u32 %s455_s13, 4  ;;  %s452_s25 = scalar_lea.sflag [#allocation6], %s451_s11  ;;  %s464_s17 = int_to_ptr.vmem [resolvable:$true] %s463_s17 }
  0x3f   : > { %s1440_s27 = sshra.s32 %s462_s20, 4  ;;  %s1447_s30 = scalar_lea.hbm %s1959_s1, 48  ;;  %s1441_s27 = int_to_ptr.hbm [resolvable:$true] %s1440_s27 }
  0x40   : > { %s1442_s15 = scalar_lea.hbm %s1441_s27, 24  ;;  %p1448_p13 = scmp.lt.s32.totalorder %s1441_s27, %s1959_s1 }
  0x41   : > { %p1443_p11 = scmp.ne.s32.totalorder %s1441_s27, %s1442_s15  ;;  %p1449_p0 = scmp.lt.s32.totalorder %s1447_s30, %s1442_s15 }
  0x43   : > { %p1445_p2 = pnand %p1443_p11, %p1414_p10  ;;  %p1450_p3 = por %p1449_p0, %p1448_p13 }
  0x45   : > { %p1446_p12 = pneg %p1445_p2 }
  0x47   : > { %p1451_p5 = pnand %p1450_p3, %p1446_p12 }
  0x49   : > { %1454 = shalt.err (!%p1451_p5)
}
  0x4a   : > { %1262 = dma.hbm_to_vmem [thread:$0]  (!%p1727_p9), %s462_s20, 384, %s464_s17, %s452_s25, %s2006_s22, %s2006_s22, %s2005_s23  }
  0x4b   : > { %475 = sbr.rel (%p1672_p8) target bundleno = 811 (0x32b), region = 68  ;;  %s1768_s11 = sand.u32 (!%p1672_p8), 1, %s1540_s26  }
  0x4c   : > { %s1771_s18 = smul.u32 (!%p1672_p8), 24, %s1768_s11  ;;  %s478_s21 = scalar_lea.sflag (!%p1672_p8), [#allocation3], %s1768_s11 }
  0x4e   : > { %s1775_s16 = scalar_lea.vmem (!%p1672_p8), [#allocation2], %s1771_s18 }
  0x50   : > { %1515 = dma.done.wait (%p1659_p4), %s478_s21, 384  }
  0x51   : > { %1517 = vsyncadd (%p1659_p4), %s478_s21, 4294966912  ;;  %s487_s19 = sand.u32 1, %s1650_s29   ;;  %s1783_s2 = scalar_lea.vmem [#allocation5], %s1771_s18 }
  0x52   : > { %s488_s20 = scalar_lea.sflag [#allocation6], %s487_s19 }
  0x53   : > { %1519 = dma.done.wait (%p1659_p4), %s488_s20, 384  }
  0x54   : > { %1521 = vsyncadd (%p1659_p4), %s488_s20, 4294966912 }
  0x55   : > { %1523 = dma.done.wait (%p55_p1), [#allocation6], 8192  }
  0x56   : > { %1525 = vsyncadd (%p55_p1), [#allocation6], 4294959104 }
  0x57   : > { %1527 = dma.done.wait (%p55_p1), [#allocation9], 6144  }
  0x58   : > { %1529 = vsyncadd (%p55_p1), [#allocation9], 4294961152  ;;  %v609_v0 = vld [vmem:[#allocation7 + $0xf8] sm:$0xff]  ;;  %v607_v1 = vld [vmem:[#allocation7 + $0xe8] sm:$0xff]  ;;  %s1858_s14 = scalar_lea.vmem [#allocation11], %s1771_s18  ;;  %s1192_s22 = smul.u32 24, %s1650_s29 }
  0x59   : > { %v641_v2 = vld [vmem:[#allocation7 + $0x1f8] sm:$0xff]  ;;  %700 = vmatpush.msra.mxu2 %v609_v0  ;;  %v608_v3 = vld [vmem:[#allocation7 + $0xf0] sm:$0xff]  ;;  %v639_v4 = vld [vmem:[#allocation7 + $0x1e8] sm:$0xff]  ;;  %s1018_s23 = sshll.u32 %s1858_s14, 4  ;;  %s2008_s25 = sld [smem:[#allocation27_spill]]  ;;  %s1019_s23 = int_to_ptr.vmem [resolvable:$true] %s1018_s23 }
  0x5a   : > { %726 = vmatpush.msra.mxu3 %v641_v2  ;;  %648 = vmatpush.msra.mxu0 %v608_v3  ;;  %v605_v5 = vld [vmem:[#allocation7 + $0xd8] sm:$0xff]  ;;  %v606_v6 = vld [vmem:[#allocation7 + $0xe0] sm:$0xff]  ;;  %v640_v7 = vld [vmem:[#allocation7 + $0x1f0] sm:$0xff]  ;;  %s1001_s4 = scalar_lea.sflag [#allocation4], %s1768_s11 }
  0x5b   : > { %701 = vmatpush.msra.mxu2 %v607_v1  ;;  %v637_v8 = vld [vmem:[#allocation7 + $0x1d8] sm:$0xff]  ;;  %v604_v9 = vld [vmem:[#allocation7 + $0xd0] sm:$0xff]  ;;  %v638_v10 = vld [vmem:[#allocation7 + $0x1e0] sm:$0xff]  ;;  %674 = vmatpush.msra.mxu1 %v640_v7 }
  0x5c   : > { %727 = vmatpush.msra.mxu3 %v639_v4  ;;  %649 = vmatpush.msra.mxu0 %v606_v6  ;;  %v603_v11 = vld [vmem:[#allocation7 + $0xc8] sm:$0xff]  ;;  %v602_v13 = vld [vmem:[#allocation7 + $0xc0] sm:$0xff]  ;;  %v636_v14 = vld [vmem:[#allocation7 + $0x1d0] sm:$0xff] }
  0x5d   : > { %v635_v12 = vld [vmem:[#allocation7 + $0x1c8] sm:$0xff]  ;;  %702 = vmatpush.msra.mxu2 %v605_v5  ;;  %675 = vmatpush.msra.mxu1 %v638_v10  ;;  %v601_v15 = vld [vmem:[#allocation7 + $0xb8] sm:$0xff]  ;;  %v600_v17 = vld [vmem:[#allocation7 + $0xb0] sm:$0xff] }
  0x5e   : > { %728 = vmatpush.msra.mxu3 %v637_v8  ;;  %650 = vmatpush.msra.mxu0 %v604_v9  ;;  %v633_v16 = vld [vmem:[#allocation7 + $0x1b8] sm:$0xff]  ;;  %v634_v18 = vld [vmem:[#allocation7 + $0x1c0] sm:$0xff]  ;;  %v599_v19 = vld [vmem:[#allocation7 + $0xa8] sm:$0xff] }
  0x5f   : > { %703 = vmatpush.msra.mxu2 %v603_v11  ;;  %676 = vmatpush.msra.mxu1 %v636_v14  ;;  %v631_v20 = vld [vmem:[#allocation7 + $0x1a8] sm:$0xff]  ;;  %v598_v21 = vld [vmem:[#allocation7 + $0xa0] sm:$0xff]  ;;  %v632_v22 = vld [vmem:[#allocation7 + $0x1b0] sm:$0xff]  ;;  %s2009_s15 = smov %s2008_s25  ;;  %s1017_s27 = scalar_lea.hbm %s2008_s25, %s1192_s22 }
  0x60   : > { %729 = vmatpush.msra.mxu3 %v635_v12  ;;  %651 = vmatpush.msra.mxu0 %v602_v13  ;;  %v597_v23 = vld [vmem:[#allocation7 + $0x98] sm:$0xff]  ;;  %v596_v25 = vld [vmem:[#allocation7 + $0x90] sm:$0xff]  ;;  %v630_v26 = vld [vmem:[#allocation7 + $0x1a0] sm:$0xff]  ;;  %s1020_s8 = sshll.u32 %s1017_s27, 4  ;;  %s1021_s8 = int_to_ptr.hbm [resolvable:$true] %s1020_s8 }
  0x61   : > { %704 = vmatpush.msra.mxu2 %v601_v15  ;;  %677 = vmatpush.msra.mxu1 %v634_v18  ;;  %v629_v24 = vld [vmem:[#allocation7 + $0x198] sm:$0xff]  ;;  %v595_v27 = vld [vmem:[#allocation7 + $0x88] sm:$0xff]  ;;  %v594_v29 = vld [vmem:[#allocation7 + $0x80] sm:$0xff]  ;;  %s1484_s30 = sshra.s32 %s1021_s8, 4  ;;  %s1485_s30 = int_to_ptr.hbm [resolvable:$true] %s1484_s30 }
  0x62   : > { %730 = vmatpush.msra.mxu3 %v633_v16  ;;  %652 = vmatpush.msra.mxu0 %v600_v17  ;;  %v627_v28 = vld [vmem:[#allocation7 + $0x188] sm:$0xff]  ;;  %v628_v30 = vld [vmem:[#allocation7 + $0x190] sm:$0xff]  ;;  %v593_v31 = vld [vmem:[#allocation7 + $0x78] sm:$0xff]  ;;  %s1486_s12 = scalar_lea.hbm %s1485_s30, 24  ;;  %p1491_p9 = scmp.lt.s32.totalorder %s1485_s30, %s2009_s15 }
  0x63   : > { %705 = vmatpush.msra.mxu2 %v599_v19  ;;  %678 = vmatpush.msra.mxu1 %v632_v22  ;;  %v625_v32 = vld [vmem:[#allocation7 + $0x178] sm:$0xff]  ;;  %v592_v33 = vld [vmem:[#allocation7 + $0x70] sm:$0xff]  ;;  %v626_v34 = vld [vmem:[#allocation7 + $0x180] sm:$0xff]  ;;  %p1487_p1 = scmp.ne.s32.totalorder %s1485_s30, %s1486_s12 }
  0x64   : > { %731 = vmatpush.msra.mxu3 %v631_v20  ;;  %653 = vmatpush.msra.mxu0 %v598_v21  ;;  %v591_v35 = vld [vmem:[#allocation7 + $0x68] sm:$0xff]  ;;  %v590_v37 = vld [vmem:[#allocation7 + $0x60] sm:$0xff]  ;;  %v624_v38 = vld [vmem:[#allocation7 + $0x170] sm:$0xff] }
  0x65   : > { %706 = vmatpush.msra.mxu2 %v597_v23  ;;  %679 = vmatpush.msra.mxu1 %v630_v26  ;;  %v623_v36 = vld [vmem:[#allocation7 + $0x168] sm:$0xff]  ;;  %v589_v39 = vld [vmem:[#allocation7 + $0x58] sm:$0xff]  ;;  %v588_v41 = vld [vmem:[#allocation7 + $0x50] sm:$0xff]  ;;  %p1488_p4 = pnand %p1487_p1, %p1718_p7 }
  0x66   : > { %732 = vmatpush.msra.mxu3 %v629_v24  ;;  %654 = vmatpush.msra.mxu0 %v596_v25  ;;  %v621_v40 = vld [vmem:[#allocation7 + $0x158] sm:$0xff]  ;;  %v622_v42 = vld [vmem:[#allocation7 + $0x160] sm:$0xff]  ;;  %v587_v43 = vld [vmem:[#allocation7 + $0x48] sm:$0xff] }
  0x67   : > { %707 = vmatpush.msra.mxu2 %v595_v27  ;;  %680 = vmatpush.msra.mxu1 %v628_v30  ;;  %v619_v44 = vld [vmem:[#allocation7 + $0x148] sm:$0xff]  ;;  %v586_v45 = vld [vmem:[#allocation7 + $0x40] sm:$0xff]  ;;  %v620_v46 = vld [vmem:[#allocation7 + $0x150] sm:$0xff]  ;;  %p1489_p8 = pneg %p1488_p4 }
  0x68   : > { %733 = vmatpush.msra.mxu3 %v627_v28  ;;  %655 = vmatpush.msra.mxu0 %v594_v29  ;;  %v585_v47 = vld [vmem:[#allocation7 + $0x38] sm:$0xff]  ;;  %v584_v49 = vld [vmem:[#allocation7 + $0x30] sm:$0xff]  ;;  %v618_v50 = vld [vmem:[#allocation7 + $0x140] sm:$0xff] }
  0x69   : > { %708 = vmatpush.msra.mxu2 %v593_v31  ;;  %681 = vmatpush.msra.mxu1 %v626_v34  ;;  %v617_v48 = vld [vmem:[#allocation7 + $0x138] sm:$0xff]  ;;  %v583_v51 = vld [vmem:[#allocation7 + $0x28] sm:$0xff]  ;;  %v582_v53 = vld [vmem:[#allocation7 + $0x20] sm:$0xff] }
  0x6a   : > { %734 = vmatpush.msra.mxu3 %v625_v32  ;;  %656 = vmatpush.msra.mxu0 %v592_v33  ;;  %v615_v52 = vld [vmem:[#allocation7 + $0x128] sm:$0xff]  ;;  %v616_v54 = vld [vmem:[#allocation7 + $0x130] sm:$0xff]  ;;  %v569_v55 = vld [vmem:[%s1775_s16] sm:$0xff] }
  0x6b   : > { %709 = vmatpush.msra.mxu2 %v591_v35  ;;  %682 = vmatpush.msra.mxu1 %v624_v38  ;;  %v572_v56 = vld [vmem:[%s1783_s2] sm:$0xff]  ;;  %v581_v57 = vld [vmem:[#allocation7 + $0x18] sm:$0xff]  ;;  %v614_v60 = vld [vmem:[#allocation7 + $0x120] sm:$0xff] }
  0x6c   : > { %735 = vmatpush.msra.mxu3 %v623_v36  ;;  %657 = vmatpush.msra.mxu0 %v590_v37  ;;  %v613_v58 = vld [vmem:[#allocation7 + $0x118] sm:$0xff]  ;;  %v580_v59 = vld [vmem:[#allocation7 + $0x10] sm:$0xff]  ;;  %v579_v61 = vld [vmem:[#allocation7 + $0x8] sm:$0xff]  ;;  %v575_v63 = vsub.f32 %v569_v55, %v572_v56 }
  0x6d   : > { %710 = vmatpush.msra.mxu2 %v589_v39  ;;  %683 = vmatpush.msra.mxu1 %v622_v42  ;;  %v611_v62 = vld [vmem:[#allocation7 + $0x108] sm:$0xff]  ;;  %v578_v0 = vld [vmem:[#allocation7] sm:$0xff]  ;;  %v612_v1 = vld [vmem:[#allocation7 + $0x110] sm:$0xff] }
  0x6e   : > { %736 = vmatpush.msra.mxu3 %v621_v40  ;;  %658 = vmatpush.msra.mxu0 %v588_v41  ;;  %v610_v2 = vld [vmem:[#allocation7 + $0x100] sm:$0xff]  ;;  %v773_v3 = vld [vmem:[#allocation8 + $0x78] sm:$0xff]  ;;  %v772_v6 = vld [vmem:[#allocation8 + $0x70] sm:$0xff] }
  0x6f   : > { %711 = vmatpush.msra.mxu2 %v587_v43  ;;  %684 = vmatpush.msra.mxu1 %v620_v46  ;;  %v570_v4 = vld [vmem:[%s1775_s16 + $0x8] sm:$0xff]  ;;  %v573_v5 = vld [vmem:[%s1783_s2 + $0x8] sm:$0xff]  ;;  %v571_v15 = vld [vmem:[%s1775_s16 + $0x10] sm:$0xff] }
  0x70   : > { %737 = vmatpush.msra.mxu3 %v619_v44  ;;  %659 = vmatpush.msra.mxu0 %v586_v45  ;;  %v789_v7 = vld [vmem:[#allocation8 + $0xf8] sm:$0xff]  ;;  %v576_v8 = vsub.f32 %v570_v4, %v573_v5  ;;  %v771_v9 = vld [vmem:[#allocation8 + $0x68] sm:$0xff]  ;;  %v788_v10 = vld [vmem:[#allocation8 + $0xf0] sm:$0xff] }
  0x71   : > { %712 = vmatpush.msra.mxu2 %v585_v47  ;;  %685 = vmatpush.msra.mxu1 %v618_v50  ;;  %v770_v11 = vld [vmem:[#allocation8 + $0x60] sm:$0xff]  ;;  %v787_v12 = vld [vmem:[#allocation8 + $0xe8] sm:$0xff]  ;;  %v769_v13 = vld [vmem:[#allocation8 + $0x58] sm:$0xff] }
  0x72   : > { %738 = vmatpush.msra.mxu3 %v617_v48  ;;  %660 = vmatpush.msra.mxu0 %v584_v49  ;;  %v786_v14 = vld [vmem:[#allocation8 + $0xe0] sm:$0xff]  ;;  %v768_v17 = vld [vmem:[#allocation8 + $0x50] sm:$0xff]  ;;  %v785_v18 = vld [vmem:[#allocation8 + $0xd8] sm:$0xff] }
  0x73   : > { %713 = vmatpush.msra.mxu2 %v583_v51  ;;  %686 = vmatpush.msra.mxu1 %v616_v54  ;;  %v574_v16 = vld [vmem:[%s1783_s2 + $0x10] sm:$0xff]  ;;  %v767_v20 = vld [vmem:[#allocation8 + $0x48] sm:$0xff]  ;;  %v784_v21 = vld [vmem:[#allocation8 + $0xd0] sm:$0xff] }
  0x74   : > { %739 = vmatpush.msra.mxu3 %v615_v52  ;;  %661 = vmatpush.msra.mxu0 %v582_v53  ;;  %v577_v19 = vsub.f32 %v571_v15, %v574_v16  ;;  %v766_v22 = vld [vmem:[#allocation8 + $0x40] sm:$0xff]  ;;  %v783_v23 = vld [vmem:[#allocation8 + $0xc8] sm:$0xff]  ;;  %v765_v24 = vld [vmem:[#allocation8 + $0x38] sm:$0xff] }
  0x75   : > { %714 = vmatpush.msra.mxu2 %v581_v57  ;;  %687 = vmatpush.msra.mxu1 %v614_v60  ;;  %v782_v25 = vld [vmem:[#allocation8 + $0xc0] sm:$0xff]  ;;  %v764_v26 = vld [vmem:[#allocation8 + $0x30] sm:$0xff]  ;;  %v781_v27 = vld [vmem:[#allocation8 + $0xb8] sm:$0xff] }
  0x76   : > { %740 = vmatpush.msra.mxu3 %v613_v58  ;;  %662 = vmatpush.msra.mxu0 %v580_v59  ;;  %v763_v28 = vld [vmem:[#allocation8 + $0x28] sm:$0xff]  ;;  %v780_v29 = vld [vmem:[#allocation8 + $0xb0] sm:$0xff]  ;;  %v762_v30 = vld [vmem:[#allocation8 + $0x20] sm:$0xff] }
  0x77   : > { %715 = vmatpush.msra.mxu2 %v579_v61  ;;  %688 = vmatpush.msra.mxu1 %v612_v1  ;;  %v779_v31 = vld [vmem:[#allocation8 + $0xa8] sm:$0xff]  ;;  %v761_v32 = vld [vmem:[#allocation8 + $0x18] sm:$0xff]  ;;  %v778_v33 = vld [vmem:[#allocation8 + $0xa0] sm:$0xff] }
  0x78   : > { %741 = vmatpush.msra.mxu3 %v611_v62  ;;  %716 = vmatmul.f32.vlgmr.msra.gmra.mxu2 %v569_v55  ;;  %v760_v34 = vld [vmem:[#allocation8 + $0x10] sm:$0xff]  ;;  %v777_v35 = vld [vmem:[#allocation8 + $0x98] sm:$0xff]  ;;  %v759_v36 = vld [vmem:[#allocation8 + $0x8] sm:$0xff] }
  0x79   : > { %742 = vmatmul.f32.vlgmr.msra.gmra.mxu3 %v575_v63  ;;  %663 = vmatpush.msra.mxu0 %v578_v0  ;;  %v776_v37 = vld [vmem:[#allocation8 + $0x90] sm:$0xff]  ;;  %v758_v38 = vld [vmem:[#allocation8] sm:$0xff]  ;;  %v775_v39 = vld [vmem:[#allocation8 + $0x88] sm:$0xff] }
  0x7a   : > { %664 = vmatmul.f32.vlgmr.msra.gmra.mxu0 %v569_v55  ;;  %689 = vmatpush.msra.mxu1 %v610_v2  ;;  %v774_v40 = vld [vmem:[#allocation8 + $0x80] sm:$0xff]  ;;  %v867_v42 = vld [vmem:[%s1964_s6 + $0x78] sm:$0xff]  ;;  %v866_v43 = vld [vmem:[%s1964_s6 + $0x70] sm:$0xff] }
  0x7b   : > { %794 = vmatpush.msrb.mxu0 %v773_v3  ;;  %690 = vmatmul.f32.vlgmr.msra.gmra.mxu1 %v575_v63  ;;  %v642_v41 = vld [vmem:[%s1961_s3] sm:$0x3]  ;;  %v865_v45 = vld [vmem:[%s1964_s6 + $0x68] sm:$0xff]  ;;  %v863_v50 = vld [vmem:[%s1964_s6 + $0x58] sm:$0xff] }
  0x7c   : > { %820 = vmatpush.msrb.mxu1 %v789_v7  ;;  %872 = vmatpush.msrb.mxu2 %v867_v42  ;;  %v644_v44 = vperm.slane %v642_v41, 0  ;;  %v864_v46 = vld [vmem:[%s1964_s6 + $0x60] sm:$0xff]  ;;  %v645_v49 = vperm.slane %v642_v41, 1  ;;  %v862_v53 = vld [vmem:[%s1964_s6 + $0x50] sm:$0xff]  ;;  %v861_v58 = vld [vmem:[%s1964_s6 + $0x48] sm:$0xff] }
  0x7d   : > { %795 = vmatpush.msrb.mxu0 %v772_v6  ;;  %v860_v60 = vld [vmem:[%s1964_s6 + $0x40] sm:$0xff]  ;;  %v859_v0 = vld [vmem:[%s1964_s6 + $0x38] sm:$0xff]  ;;  %v858_v3 = vld [vmem:[%s1964_s6 + $0x30] sm:$0xff] }
  0x7e   : > { %821 = vmatpush.msrb.mxu1 %v788_v10  ;;  %873 = vmatpush.msrb.mxu2 %v866_v43  ;;  %v856_v10 = vld [vmem:[%s1964_s6 + $0x20] sm:$0xff]  ;;  %v907_v43 = vld [vmem:[#allocation10 + $0x30] sm:$0xff] }
  0x7f   : > { %796 = vmatpush.msrb.mxu0 %v771_v9 }
  0x80   : > { %719 = vmatmul.f32.gmra.mxu2 %v570_v4  ;;  %822 = vmatpush.msrb.mxu1 %v787_v12 }
  0x81   : > { %745 = vmatmul.f32.gmra.mxu3 %v576_v8  ;;  %797 = vmatpush.msrb.mxu0 %v770_v11 }
  0x82   : > { %667 = vmatmul.f32.gmra.mxu0 %v570_v4  ;;  %823 = vmatpush.msrb.mxu1 %v786_v14 }
  0x83   : > { %798 = vmatpush.msrb.mxu0 %v769_v13  ;;  %693 = vmatmul.f32.gmra.mxu1 %v576_v8  ;;  %v857_v8 = vld [vmem:[%s1964_s6 + $0x28] sm:$0xff] }
  0x84   : > { %824 = vmatpush.msrb.mxu1 %v785_v18  ;;  %874 = vmatpush.msrb.mxu2 %v865_v45 }
  0x85   : > { %799 = vmatpush.msrb.mxu0 %v768_v17 }
  0x86   : > { %825 = vmatpush.msrb.mxu1 %v784_v21  ;;  %875 = vmatpush.msrb.mxu2 %v864_v46 }
  0x87   : > { %800 = vmatpush.msrb.mxu0 %v767_v20 }
  0x88   : > { %722 = vmatmul.f32.gmra.mxu2 %v571_v15  ;;  %826 = vmatpush.msrb.mxu1 %v783_v23  ;;  %v854_v23 = vld [vmem:[%s1964_s6 + $0x10] sm:$0xff] }
  0x89   : > { %748 = vmatmul.f32.gmra.mxu3 %v577_v19  ;;  %801 = vmatpush.msrb.mxu0 %v766_v22  ;;  %v855_v22 = vld [vmem:[%s1964_s6 + $0x18] sm:$0xff] }
  0x8a   : > { %670 = vmatmul.f32.gmra.mxu0 %v571_v15  ;;  %827 = vmatpush.msrb.mxu1 %v782_v25  ;;  %v852_v25 = vld [vmem:[%s1964_s6] sm:$0xff] }
  0x8b   : > { %802 = vmatpush.msrb.mxu0 %v765_v24  ;;  %696 = vmatmul.f32.gmra.mxu1 %v577_v19  ;;  %v853_v24 = vld [vmem:[%s1964_s6 + $0x8] sm:$0xff] }
  0x8c   : > { %828 = vmatpush.msrb.mxu1 %v781_v27  ;;  %876 = vmatpush.msrb.mxu2 %v863_v50  ;;  %v915_v27 = vld [vmem:[#allocation10 + $0x70] sm:$0xff] }
  0x8d   : > { %803 = vmatpush.msrb.mxu0 %v764_v26  ;;  %v916_v26 = vld [vmem:[#allocation10 + $0x78] sm:$0xff] }
  0x8e   : > { %829 = vmatpush.msrb.mxu1 %v780_v29  ;;  %877 = vmatpush.msrb.mxu2 %v862_v53  ;;  %v1316_v29 = vld [vmem:[%s1963_s5] ss:$0 sm:$0xff] }
  0x8f   : > { %804 = vmatpush.msrb.mxu0 %v763_v28  ;;  %921 = vmatpush.msrb.mxu3 %v916_v26  ;;  %v914_v28 = vld [vmem:[#allocation10 + $0x68] sm:$0xff] }
  0x90   : > { %830 = vmatpush.msrb.mxu1 %v779_v31  ;;  %878 = vmatpush.msrb.mxu2 %v861_v58  ;;  %v912_v31 = vld [vmem:[#allocation10 + $0x58] sm:$0xff] }
  0x91   : > { %805 = vmatpush.msrb.mxu0 %v762_v30  ;;  %922 = vmatpush.msrb.mxu3 %v915_v27  ;;  %v913_v30 = vld [vmem:[#allocation10 + $0x60] sm:$0xff]  ;;  %v965_v58 = vld [vmem:[%s1968_s10 + $0x78] sm:$0xff] }
  0x92   : > { %831 = vmatpush.msrb.mxu1 %v778_v33  ;;  %879 = vmatpush.msrb.mxu2 %v860_v60  ;;  %v963_v60 = vld [vmem:[%s1968_s10 + $0x68] sm:$0xff] }
  0x93   : > { %806 = vmatpush.msrb.mxu0 %v761_v32  ;;  %923 = vmatpush.msrb.mxu3 %v914_v28 }
  0x94   : > { %832 = vmatpush.msrb.mxu1 %v777_v35  ;;  %880 = vmatpush.msrb.mxu2 %v859_v0  ;;  %v910_v35 = vld [vmem:[#allocation10 + $0x48] sm:$0xff]  ;;  %v960_v0 = vld [vmem:[%s1968_s10 + $0x50] sm:$0xff] }
  0x95   : > { %807 = vmatpush.msrb.mxu0 %v760_v34  ;;  %924 = vmatpush.msrb.mxu3 %v913_v30  ;;  %v911_v34 = vld [vmem:[#allocation10 + $0x50] sm:$0xff] }
  0x96   : > { %833 = vmatpush.msrb.mxu1 %v776_v37  ;;  %881 = vmatpush.msrb.mxu2 %v858_v3 }
  0x97   : > { %808 = vmatpush.msrb.mxu0 %v759_v36  ;;  %925 = vmatpush.msrb.mxu3 %v912_v31 }
  0x98   : > { %834 = vmatpush.msrb.mxu1 %v775_v39  ;;  %882 = vmatpush.msrb.mxu2 %v857_v8  ;;  %v955_v8 = vld [vmem:[%s1968_s10 + $0x28] sm:$0xff] }
  0x99   : > { %809 = vmatpush.msrb.mxu0 %v758_v38  ;;  %926 = vmatpush.msrb.mxu3 %v911_v34  ;;  %v909_v38 = vld [vmem:[#allocation10 + $0x40] sm:$0xff] }
  0x9a   : > { %835 = vmatpush.msrb.mxu1 %v774_v40  ;;  %883 = vmatpush.msrb.mxu2 %v856_v10  ;;  %v908_v40 = vld [vmem:[#allocation10 + $0x38] sm:$0xff] }
  0x9b   : > { %927 = vmatpush.msrb.mxu3 %v910_v35  ;;  %970 = vmatpush.msra.mxu0 %v965_v58 }
  0x9c   : > { %884 = vmatpush.msrb.mxu2 %v855_v22  ;;  %1193 = vmatpush.msra.mxu1 %v965_v58 }
  0x9d   : > { %928 = vmatpush.msrb.mxu3 %v909_v38 }
  0x9e   : > { %885 = vmatpush.msrb.mxu2 %v854_v23 }
  0x9f   : > { %929 = vmatpush.msrb.mxu3 %v908_v40 }
  0xa0   : > { %886 = vmatpush.msrb.mxu2 %v853_v24 }
  0xa1   : > { %930 = vmatpush.msrb.mxu3 %v907_v43 }
  0xa2   : > { %887 = vmatpush.msrb.mxu2 %v852_v25 }
  0xa4   : > { %1194 = vmatpush.msra.mxu2 %v965_v58 }
  0xf7   : > { %v665_v47 = vpop.f32.mrf.mxu0 }
  0xf8   : > { %v666_v48 = vadd.f32 %v665_v47, %v644_v44  ;;  %v691_v51 = vpop.f32.mrf.mxu1  ;;  %v905_v47 = vld [vmem:[#allocation10 + $0x20] sm:$0xff] }
  0xfa   : > { %v692_v52 = vadd.f32 %v691_v51, %v666_v48 }
  0xfb   : > { %v717_v54 = vpop.f32.mrf.mxu2 }
  0xfc   : > { %v743_v55 = vpop.f32.mrf.mxu3  ;;  %v752_v56 = vmax.f32 %v692_v52, 0.0  ;;  %v718_v57 = vadd.f32 %v717_v54, %v645_v49 }
  0xfe   : > { %v744_v59 = vadd.f32 %v743_v55, %v718_v57  ;;  %810 = vmatmul.f32.vlgmr.msrb.gmra.mxu0 %v752_v56  ;;  %v903_v55 = vld [vmem:[#allocation10 + $0x10] sm:$0xff]  ;;  %v902_v56 = vld [vmem:[#allocation10 + $0x8] sm:$0xff]  ;;  %v901_v57 = vld [vmem:[#allocation10] sm:$0xff] }
  0xff   : > { %v668_v61 = vpop.f32.mrf.mxu0 }
 0x100   : > { %v753_v62 = vmax.f32 %v744_v59, 0.0  ;;  %v669_v63 = vadd.f32 %v668_v61, %v644_v44  ;;  %v694_v1 = vpop.f32.mrf.mxu1  ;;  %v964_v59 = vld [vmem:[%s1968_s10 + $0x70] sm:$0xff]  ;;  %v962_v61 = vld [vmem:[%s1968_s10 + $0x60] sm:$0xff] }
 0x101   : > { %971 = vmatpush.msra.mxu0 %v964_v59  ;;  %1195 = vmatpush.msra.mxu1 %v964_v59 }
 0x102   : > { %836 = vmatmul.f32.vlgmr.msrb.gmra.mxu1 %v753_v62  ;;  %v695_v2 = vadd.f32 %v694_v1, %v669_v63  ;;  %1196 = vmatpush.msra.mxu2 %v964_v59  ;;  %v961_v62 = vld [vmem:[%s1968_s10 + $0x58] sm:$0xff]  ;;  %v1317_v63 = vld [vmem:[%s1965_s7] ss:$0 sm:$0xff]  ;;  %v959_v1 = vld [vmem:[%s1968_s10 + $0x48] sm:$0xff] }
 0x103   : > { %v720_v4 = vpop.f32.mrf.mxu2  ;;  %972 = vmatpush.msra.mxu0 %v963_v60  ;;  %1197 = vmatpush.msra.mxu1 %v963_v60 }
 0x104   : > { %v746_v5 = vpop.f32.mrf.mxu3  ;;  %v754_v6 = vmax.f32 %v695_v2, 0.0  ;;  %v721_v7 = vadd.f32 %v720_v4, %v645_v49  ;;  %1198 = vmatpush.msra.mxu2 %v963_v60  ;;  %v958_v4 = vld [vmem:[%s1968_s10 + $0x40] sm:$0xff] }
 0x105   : > { %973 = vmatpush.msra.mxu0 %v962_v61  ;;  %1199 = vmatpush.msra.mxu1 %v962_v61 }
 0x106   : > { %v747_v9 = vadd.f32 %v746_v5, %v721_v7  ;;  %813 = vmatmul.f32.gmra.mxu0 %v754_v6  ;;  %1200 = vmatpush.msra.mxu2 %v962_v61  ;;  %v957_v6 = vld [vmem:[%s1968_s10 + $0x38] sm:$0xff]  ;;  %v956_v7 = vld [vmem:[%s1968_s10 + $0x30] sm:$0xff] }
 0x107   : > { %v671_v11 = vpop.f32.mrf.mxu0  ;;  %974 = vmatpush.msra.mxu0 %v961_v62  ;;  %1201 = vmatpush.msra.mxu1 %v961_v62 }
 0x108   : > { %v755_v12 = vmax.f32 %v747_v9, 0.0  ;;  %v672_v13 = vadd.f32 %v671_v11, %v644_v44  ;;  %v697_v14 = vpop.f32.mrf.mxu1  ;;  %v906_v44 = vld [vmem:[#allocation10 + $0x28] sm:$0xff]  ;;  %1202 = vmatpush.msra.mxu2 %v961_v62  ;;  %v954_v11 = vld [vmem:[%s1968_s10 + $0x20] sm:$0xff] }
 0x109   : > { %931 = vmatpush.msrb.mxu3 %v906_v44  ;;  %975 = vmatpush.msra.mxu0 %v960_v0 }
 0x10a   : > { %839 = vmatmul.f32.gmra.mxu1 %v755_v12  ;;  %v698_v15 = vadd.f32 %v697_v14, %v672_v13  ;;  %1204 = vmatpush.msra.mxu2 %v960_v0  ;;  %v953_v13 = vld [vmem:[%s1968_s10 + $0x18] sm:$0xff] }
 0x10b   : > { %v723_v16 = vpop.f32.mrf.mxu2  ;;  %932 = vmatpush.msrb.mxu3 %v905_v47  ;;  %1203 = vmatpush.msra.mxu1 %v960_v0 }
 0x10c   : > { %v749_v17 = vpop.f32.mrf.mxu3  ;;  %v756_v18 = vmax.f32 %v698_v15, 0.0  ;;  %v724_v19 = vadd.f32 %v723_v16, %v645_v49  ;;  %v904_v49 = vld [vmem:[#allocation10 + $0x18] sm:$0xff]  ;;  %976 = vmatpush.msra.mxu0 %v959_v1  ;;  %1206 = vmatpush.msra.mxu2 %v959_v1 }
 0x10d   : > { %933 = vmatpush.msrb.mxu3 %v904_v49  ;;  %1205 = vmatpush.msra.mxu1 %v959_v1 }
 0x10e   : > { %v750_v20 = vadd.f32 %v749_v17, %v724_v19  ;;  %816 = vmatmul.f32.gmra.mxu0 %v756_v18  ;;  %1208 = vmatpush.msra.mxu2 %v958_v4  ;;  %v952_v17 = vld [vmem:[%s1968_s10 + $0x10] sm:$0xff]  ;;  %v951_v18 = vld [vmem:[%s1968_s10 + $0x8] sm:$0xff]  ;;  %v950_v19 = vld [vmem:[%s1968_s10] sm:$0xff] }
 0x10f   : > { %934 = vmatpush.msrb.mxu3 %v903_v55  ;;  %977 = vmatpush.msra.mxu0 %v958_v4 }
 0x110   : > { %v757_v21 = vmax.f32 %v750_v20, 0.0  ;;  %1207 = vmatpush.msra.mxu1 %v958_v4  ;;  %1210 = vmatpush.msra.mxu2 %v957_v6  ;;  %v1318_v20 = vld [vmem:[%s1967_s9] ss:$0 sm:$0xff] }
 0x111   : > { %935 = vmatpush.msrb.mxu3 %v902_v56  ;;  %978 = vmatpush.msra.mxu0 %v957_v6 }
 0x112   : > { %842 = vmatmul.f32.gmra.mxu1 %v757_v21  ;;  %1212 = vmatpush.msra.mxu2 %v956_v7 }
 0x113   : > { %936 = vmatpush.msrb.mxu3 %v901_v57  ;;  %1209 = vmatpush.msra.mxu1 %v957_v6 }
 0x114   : > { %979 = vmatpush.msra.mxu0 %v956_v7  ;;  %1214 = vmatpush.msra.mxu2 %v955_v8 }
 0x115   : > { %1211 = vmatpush.msra.mxu1 %v956_v7 }
 0x116   : > { %980 = vmatpush.msra.mxu0 %v955_v8  ;;  %1216 = vmatpush.msra.mxu2 %v954_v11 }
 0x117   : > { %1213 = vmatpush.msra.mxu1 %v955_v8 }
 0x118   : > { %981 = vmatpush.msra.mxu0 %v954_v11  ;;  %1218 = vmatpush.msra.mxu2 %v953_v13 }
 0x119   : > { %1215 = vmatpush.msra.mxu1 %v954_v11 }
 0x11a   : > { %982 = vmatpush.msra.mxu0 %v953_v13  ;;  %1220 = vmatpush.msra.mxu2 %v952_v17 }
 0x11b   : > { %1217 = vmatpush.msra.mxu1 %v953_v13 }
 0x11c   : > { %983 = vmatpush.msra.mxu0 %v952_v17  ;;  %1222 = vmatpush.msra.mxu2 %v951_v18 }
 0x11d   : > { %1219 = vmatpush.msra.mxu1 %v952_v17 }
 0x11e   : > { %984 = vmatpush.msra.mxu0 %v951_v18  ;;  %1224 = vmatpush.msra.mxu2 %v950_v19 }
 0x11f   : > { %1221 = vmatpush.msra.mxu1 %v951_v18 }
 0x120   : > { %985 = vmatpush.msra.mxu0 %v950_v19 }
 0x121   : > { %1223 = vmatpush.msra.mxu1 %v950_v19 }
 0x17b   : > { %v811_v32 = vpop.f32.mrf.mxu0 }
 0x17c   : > { %v812_v33 = vadd.f32 %v1316_v29, %v811_v32 }
 0x17f   : > { %v837_v36 = vpop.f32.mrf.mxu1 }
 0x180   : > { %v838_v37 = vadd.f32 %v837_v36, %v812_v33 }
 0x182   : > { %v846_v39 = vmax.f32 %v838_v37, 0.0 }
 0x183   : > { %v814_v41 = vpop.f32.mrf.mxu0 }
 0x184   : > { %849 = vst [vmem:[%s1858_s14] sm:$0xff] %v846_v39  ;;  %888 = vmatmul.f32.vlgmr.msrb.gmra.mxu2 %v846_v39  ;;  %v815_v42 = vadd.f32 %v1316_v29, %v814_v41 }
 0x187   : > { %v840_v45 = vpop.f32.mrf.mxu1 }
 0x188   : > { %v841_v46 = vadd.f32 %v840_v45, %v815_v42 }
 0x18a   : > { %v847_v48 = vmax.f32 %v841_v46, 0.0 }
 0x18b   : > { %v817_v50 = vpop.f32.mrf.mxu0 }
 0x18c   : > { %850 = vst [vmem:[%s1858_s14 + $0x8] sm:$0xff] %v847_v48  ;;  %891 = vmatmul.f32.gmra.mxu2 %v847_v48  ;;  %v818_v51 = vadd.f32 %v1316_v29, %v817_v50 }
 0x18f   : > { %v843_v52 = vpop.f32.mrf.mxu1 }
 0x190   : > { %v844_v53 = vadd.f32 %v843_v52, %v818_v51 }
 0x192   : > { %v848_v54 = vmax.f32 %v844_v53, 0.0 }
 0x194   : > { %851 = vst [vmem:[%s1858_s14 + $0x10] sm:$0xff] %v848_v54  ;;  %894 = vmatmul.f32.gmra.mxu2 %v848_v54  ;;  %s1490_s14 = scalar_lea.hbm %s2009_s15, 48 }
 0x195   : > { %p1492_p10 = scmp.lt.s32.totalorder %s1490_s14, %s1486_s12 }
 0x197   : > { %p1493_p11 = por %p1492_p10, %p1491_p9 }
 0x199   : > { %p1494_p2 = pnand %p1493_p11, %p1489_p8 }
 0x207   : > { %v889_v2 = vpop.f32.mrf.mxu2 }
 0x208   : > { %v890_v3 = vadd.f32 %v1317_v63, %v889_v2 }
 0x20a   : > { %v898_v5 = vmax.f32 %v890_v3, 0.0 }
 0x20c   : > { %937 = vmatmul.f32.vlgmr.msrb.gmra.mxu3 %v898_v5 }
 0x20f   : > { %v892_v9 = vpop.f32.mrf.mxu2 }
 0x210   : > { %v893_v10 = vadd.f32 %v1317_v63, %v892_v9 }
 0x212   : > { %v899_v12 = vmax.f32 %v893_v10, 0.0 }
 0x214   : > { %940 = vmatmul.f32.gmra.mxu3 %v899_v12 }
 0x217   : > { %v895_v14 = vpop.f32.mrf.mxu2 }
 0x218   : > { %v896_v15 = vadd.f32 %v1317_v63, %v895_v14 }
 0x21a   : > { %v900_v16 = vmax.f32 %v896_v15, 0.0 }
 0x21c   : > { %943 = vmatmul.f32.gmra.mxu3 %v900_v16 }
 0x28f   : > { %v938_v21 = vpop.f32.mrf.mxu3 }
 0x290   : > { %v939_v22 = vadd.f32 %v1318_v20, %v938_v21 }
 0x292   : > { %v947_v23 = vmax.f32 %v939_v22, 0.0 }
 0x294   : > { %986 = vmatmul.f32.vlgmr.msra.gmra.mxu0 %v947_v23 }
 0x297   : > { %v941_v24 = vpop.f32.mrf.mxu3 }
 0x298   : > { %v942_v25 = vadd.f32 %v1318_v20, %v941_v24 }
 0x29a   : > { %v948_v26 = vmax.f32 %v942_v25, 0.0 }
 0x29c   : > { %989 = vmatmul.f32.vlgmr.msra.gmra.mxu1 %v948_v26 }
 0x29f   : > { %v944_v27 = vpop.f32.mrf.mxu3 }
 0x2a0   : > { %v945_v28 = vadd.f32 %v1318_v20, %v944_v27 }
 0x2a2   : > { %v949_v29 = vmax.f32 %v945_v28, 0.0 }
 0x2a4   : > { %992 = vmatmul.f32.vlgmr.msra.gmra.mxu2 %v949_v29 }
 0x2a5   : > { %1497 = shalt.err (!%p1494_p2)
}
 0x2a6   : > { %s1557_s11 = smov 128   ;;  %s1558_s20 = smov 8   ;;  %vm996_vm0 = vcmask 15360  }
 0x2a7   : > { %1244 = dma.vmem_to_hbm [thread:$0]  (%p1718_p7), %s1019_s23, 384, %s1021_s8, %s1001_s4, %s1557_s11, %s1557_s11, %s1558_s20  }
 0x2a8   : > { %s563_s2 = smul.u32 3, %s1650_s29  ;;  %s2010_s25 = sld [smem:[#allocation26_spill]] }
 0x2a9   : > { %s2011_s12 = sld [smem:[#allocation28_spill]] }
 0x2aa   : > { %p564_p12 = scmp.lt.s32.totalorder %s563_s2, 5 }
 0x2ac   : > { %s2021_s2 = smov (!%p564_p12, %s563_s2), 5 }
 0x2ad   : > { %s1186_s22 = sshll.u32 %s2021_s2, 3 }
 0x2ae   : > { %v1319_v30 = vld [vmem:[%s2010_s25] ss:$0 sm:$0xff] }
 0x2af   : > { %s567_s24 = scalar_lea.vmem %s2011_s12, %s1186_s22 }
 0x311   : > { %v987_v31 = vpop.f32.mrf.mxu0 }
 0x312   : > { %v988_v32 = vadd.f32 %v1319_v30, %v987_v31 }
 0x314   : > { %997 = vst.msk [vmem:[%s567_s24] sm:$0xff] %vm996_vm0, %v988_v32 }
 0x319   : > { %v990_v33 = vpop.f32.mrf.mxu1 }
 0x31a   : > { %v991_v34 = vadd.f32 %v1319_v30, %v990_v33 }
 0x31c   : > { %998 = vst.msk [vmem:[%s567_s24 + $0x8] sm:$0xff] %vm996_vm0, %v991_v34 }
 0x327   : > { %v993_v35 = vpop.f32.mrf.mxu2 }
 0x328   : > { %v994_v36 = vadd.f32 %v1319_v30, %v993_v35 }
 0x32a   : > { %999 = vst.msk [vmem:[%s567_s24 + $0x10] sm:$0xff] %vm996_vm0, %v994_v36 }
 0x32b PF: > { %s2012_s29 = sld [smem:[#allocation17_spill]]  ;;  %p2014_p7 = scmp.ge.s32.totalorder %s1548_s28, 2 }
 0x32d   : > { %p1264_p13 = pnand %p2014_p7, %p1664_p6 }
 0x32f   : > { %p1265_p0 = pneg %p1264_p13 }
 0x331   : > { %s1039_s23 = sand.u32 1, %s2012_s29  }
 0x332   : > { %s1040_s8 = scalar_lea.sflag [#allocation4], %s1039_s23 }
 0x333   : > { %1531 = dma.done.wait (%p1265_p0), %s1040_s8, 384  }
 0x334   : > { %1533 = vsyncadd (%p1265_p0), %s1040_s8, 4294966912  ;;  %s2015_s28 = sld [smem:[#allocation20_spill]]  ;;  %s2018_s25 = smov %s1540_s26 }
 0x335   : > { %s2016_s4 = sld [smem:[#allocation18_spill]] }
 0x336   : > { %s2017_s27 = sld [smem:[#allocation21_spill]] }
 0x33a   : > { %p31_p3 = scmp.ge.s32.totalorder %s2015_s28, 4  }
 0x33b   : > { %s2019_s26 = smov %s2016_s4 }
 0x33c   :  { %33 = sbr.rel (!%p31_p3) target bundleno = 15 (0xf), region = 150 }
 0x341   :  { %1054 = vsyncpa [#allocation3], 1 }
 0x342   :  { %1056 = vsyncpa [#allocation3 + $0x1], 1 }
 0x343   :  { %1057 = vsyncpa [#allocation6], 1 }
 0x344   :  { %1059 = vsyncpa [#allocation6 + $0x1], 1 }
 0x345   :  { %1060 = vsyncpa [#allocation9], 1 }
 0x346   :  { %1061 = vsyncpa [#allocation4], 1 }
 0x347   :  { %1063 = vsyncpa [#allocation4 + $0x1], 1 }

</bundles_post_ra>
